<compile_context>
chip_gen: v7x
topology: tpu7x:2x2x1
jax: 0.10.0
libtpu: 0.0.40
codegen_flags: <defaults>
</compile_context>

<pallas_src>
import numpy as np
import jax
import jax.numpy as jnp
from jax import lax
from jax.experimental import pallas as pl
from jax.experimental.pallas import tpu as pltpu

# ---- small, deterministic STFT configuration (consistent with the torch module) ----
FILTER_LENGTH = 16                  # n_fft
HOP_LENGTH = 4
WIN_LENGTH = 16
CUTOFF = FILTER_LENGTH // 2 + 1     # 9
CUTOFF_PAD = 16                     # cutoff padded to a sublane multiple (review item)
LANE_BUDGET = 2048                  # max lanes (nb * L) packed into one grid step


# ----------------------------- parameter setup (plain numpy glue) -----------------------------
def _hann_periodic(n):
    # scipy.signal.get_window('hann', n, fftbins=True)
    return 0.5 - 0.5 * np.cos(2.0 * np.pi * np.arange(n) / n)


def _make_bases(filter_length, hop_length, win_length):
    assert filter_length >= win_length
    scale = filter_length / hop_length
    fourier_basis = np.fft.fft(np.eye(filter_length))
    cutoff = filter_length // 2 + 1
    fourier_basis = np.vstack(
        [np.real(fourier_basis[:cutoff, :]), np.imag(fourier_basis[:cutoff, :])]
    )
    forward_basis = fourier_basis.astype(np.float32)                            # (2C, F)
    inverse_basis = np.linalg.pinv(scale * fourier_basis).T.astype(np.float32)  # (2C, F)

    # win_length == filter_length -> pad_center is a no-op
    fft_window = _hann_periodic(win_length).astype(np.float32)
    forward_basis = forward_basis * fft_window[None, :]
    inverse_basis = inverse_basis * fft_window[None, :]
    return forward_basis, inverse_basis, fft_window


def _window_sumsquare(win, n_frames, hop_length, n_fft):
    n = n_fft + hop_length * (n_frames - 1)
    x = np.zeros(n, dtype=np.float32)
    win_sq = win.astype(np.float32) ** 2
    for i in range(n_frames):
        sample = i * hop_length
        x[sample:min(n, sample + n_fft)] += win_sq[:max(0, min(n_fft, n - sample))]
    return x


# ----------------------------------- Pallas kernel -----------------------------------
def _make_fused_kernel(nb, L, T, hop, n_overlap, with_magphase, cp):
    """One grid step = nb batches.  Per batch:
         polyphase signal (hop, L) -> frame block (F, L) via rolls ->
         one combined-basis matmul -> overlap-add via rolls -> wss normalize,
         plus optional mag/phase from the same matmul output.
    Layouts (lane axis last, all lane dims multiples of 128):
      p_ref  : (nb, hop, L)    cb_ref : (F + 2*cp | F, F)   wss_ref : (hop, L)
      y_ref  : (nb, hop, L)    mag_ref / phase_ref : (nb, cp, L)
      frames_ref (scratch)     : (F, L)
    """
    F = hop * n_overlap

    def kernel(p_ref, cb_ref, wss_ref, *rest):
        if with_magphase:
            y_ref, mag_ref, phase_ref, frames_ref = rest
        else:
            y_ref, frames_ref = rest

        lane = lax.broadcasted_iota(jnp.int32, (1, L), 1)
        keep = lane < T                                      # valid frame columns
        cb = cb_ref[...]
        wss = wss_ref[...]

        for i in range(nb):                                  # static unroll over packed batches
            p = p_ref[i]                                     # (hop, L)

            # frame block: frames[k*hop + r, t] = p[r, t + k]
            frames_ref[0:hop, :] = p
            for k in range(1, n_overlap):
                frames_ref[k * hop:(k + 1) * hop, :] = pltpu.roll(p, shift=L - k, axis=1)

            # single combined matmul: rows [0:F) = recon frames, [F:F+cp)/[F+cp:F+2cp) = real/imag
            out = jnp.dot(cb, frames_ref[...], preferred_element_type=jnp.float32)
            out = jnp.where(keep, out, 0.0)                  # zero invalid frame columns

            fi = out[0:F, :]                                 # (F, L)
            # polyphase overlap-add: y[r, j] = sum_k fi[k*hop + r, j - k]
            acc = fi[0:hop, :]
            for k in range(1, n_overlap):
                acc = acc + pltpu.roll(fi[k * hop:(k + 1) * hop, :], shift=k, axis=1)
            # single multiply: wss already holds scale / window_sumsquare (safe recip)
            y_ref[i] = acc * wss

            if with_magphase:
                real = out[F:F + cp, :]
                imag = out[F + cp:F + 2 * cp, :]
                mag_ref[i] = jnp.sqrt(real * real + imag * imag)
                phase_ref[i] = jnp.arctan2(imag, real)

    return kernel


# ----------------------------------- wrapper -----------------------------------
def stft_forward(input_data, forward_basis, inverse_basis, fft_window,
                 filter_length=FILTER_LENGTH, hop_length=HOP_LENGTH,
                 compute_mag_phase=True):
    B, num_samples = input_data.shape
    pad = filter_length // 2
    cutoff = filter_length // 2 + 1
    assert filter_length % hop_length == 0
    n_overlap = filter_length // hop_length                  # 4
    F = filter_length
    cp = CUTOFF_PAD

    # reflect pad (torch F.pad mode='reflect'), host/XLA glue
    padded = jnp.pad(input_data, ((0, 0), (pad, pad)), mode="reflect")
    lp = padded.shape[1]
    n_frames = (lp - filter_length) // hop_length + 1        # T
    T = n_frames
    tp = T + n_overlap - 1                                   # T + 3
    t_out = hop_length * tp                                  # == filter_length + hop*(T-1)

    # per-batch lane width: multiple of 128, >= tp (=> >= T + n_overlap - 1)
    L = ((tp + 127) // 128) * 128

    # lane-dense polyphase layout: P[b, r, j] = padded[b, j*hop + r]   (host/XLA glue)
    p_poly = jnp.transpose(padded[:, :t_out].reshape(B, tp, hop_length), (0, 2, 1))
    p_poly = jnp.pad(p_poly, ((0, 0), (0, 0), (0, L - tp)))  # (B, hop, L)

    # combined basis: R = inverse_basis.T @ forward_basis (16x16); optionally stack the
    # sublane-padded forward basis (real rows 0..8 -> 0..15, imag rows 0..8 -> 16..31).
    fwd = np.asarray(forward_basis, dtype=np.float64)        # (2C, F)
    inv = np.asarray(inverse_basis, dtype=np.float64)        # (2C, F)
    R = inv.T @ fwd                                          # (F, F)
    if compute_mag_phase:
        f_re = np.zeros((cp, F), np.float64); f_re[:cutoff] = fwd[:cutoff]
        f_im = np.zeros((cp, F), np.float64); f_im[:cutoff] = fwd[cutoff:]
        cb_np = np.vstack([R, f_re, f_im]).astype(np.float32)   # (48, 16)
    else:
        cb_np = R.astype(np.float32)                             # (16, 16)
    cb = jnp.asarray(cb_np)
    n_rows = cb_np.shape[0]

    # safe reciprocal of window_sumsquare, pre-scaled, polyphase layout, zero lane padding
    scale = float(filter_length) / float(hop_length)
    wss = _window_sumsquare(fft_window, n_frames, hop_length, filter_length)   # (t_out,)
    tiny = float(np.finfo(np.float32).tiny)
    inv_wss = np.where(wss > tiny, scale / wss, scale).astype(np.float32)
    inv_wss_ph = np.zeros((hop_length, L), np.float32)
    inv_wss_ph[:, :tp] = np.ascontiguousarray(inv_wss.reshape(tp, hop_length).T)
    inv_wss_ph = jnp.asarray(inv_wss_ph)

    # pack as many batches per grid step as the lane budget allows (amortizes grid overhead)
    nb = 1
    for d in range(1, B + 1):
        if B % d == 0 and d * L <= max(L, LANE_BUDGET):
            nb = d
    grid = (B // nb,)

    out_shape = [jax.ShapeDtypeStruct((B, hop_length, L), jnp.float32)]
    out_specs = [pl.BlockSpec((nb, hop_length, L), lambda g: (g, 0, 0))]
    if compute_mag_phase:
        out_shape += [jax.ShapeDtypeStruct((B, cp, L), jnp.float32),
                      jax.ShapeDtypeStruct((B, cp, L), jnp.float32)]
        out_specs += [pl.BlockSpec((nb, cp, L), lambda g: (g, 0, 0)),
                      pl.BlockSpec((nb, cp, L), lambda g: (g, 0, 0))]

    block_bytes = 4 * (nb * L * (2 * hop_length + (2 * cp if compute_mag_phase else 0))
                       + F * L + cb_np.size + hop_length * L)
    vmem_limit = int(min(64 * 2**20, max(32 * 2**20, 6 * block_bytes)))

    flops = 2 * B * n_rows * F * L + 4 * B * hop_length * L
    transcendentals = (2 * B * cp * L) if compute_mag_phase else 0
    bytes_accessed = 4 * (B * hop_length * L * 2
                          + (2 * B * cp * L if compute_mag_phase else 0)
                          + cb_np.size + hop_length * L)

    outs = pl.pallas_call(
        _make_fused_kernel(nb, L, T, hop_length, n_overlap, compute_mag_phase, cp),
        grid=grid,
        out_shape=tuple(out_shape),
        in_specs=[
            pl.BlockSpec((nb, hop_length, L), lambda g: (g, 0, 0)),   # polyphase signal
            pl.BlockSpec((n_rows, F), lambda g: (0, 0)),              # combined basis
            pl.BlockSpec((hop_length, L), lambda g: (0, 0)),          # scale / wss
        ],
        out_specs=tuple(out_specs),
        scratch_shapes=[pltpu.VMEM((F, L), jnp.float32)],             # frame block
        compiler_params=pltpu.CompilerParams(
            dimension_semantics=("parallel",),
            vmem_limit_bytes=vmem_limit),
        cost_estimate=pl.CostEstimate(flops=int(flops),
                                      transcendentals=int(transcendentals),
                                      bytes_accessed=int(bytes_accessed)),
    )(p_poly, cb, inv_wss_ph)

    if compute_mag_phase:
        y_ph, mag, phase = outs
    else:
        (y_ph,) = outs
        mag = phase = None

    # de-interleave polyphase output: y[b, j*hop + r] = y_ph[b, r, j]   (host/XLA glue)
    y = jnp.transpose(y_ph[:, :, :tp], (0, 2, 1)).reshape(B, t_out)
    y = y[:, pad:t_out - pad]                    # trim filter_length//2 from both ends
    recon = y.reshape(B, 1, -1)
    if compute_mag_phase:
        mag = mag[:, :cutoff, :n_frames]
        phase = phase[:, :cutoff, :n_frames]
    return recon, mag, phase


# ----------------------------------- pure numpy reference -----------------------------------
def stft_forward_ref(x, forward_basis, inverse_basis, fft_window,
                     filter_length, hop_length):
    B, _ = x.shape
    pad = filter_length // 2
    cutoff = filter_length // 2 + 1
    padded = np.pad(x, ((0, 0), (pad, pad)), mode="reflect")
    n_frames = (padded.shape[1] - filter_length) // hop_length + 1
    spec = np.zeros((B, 2 * cutoff, n_frames), np.float32)
    for b in range(B):
        for i in range(n_frames):
            seg = padded[b, i * hop_length:i * hop_length + filter_length]
            spec[b, :, i] = forward_basis @ seg
    real, imag = spec[:, :cutoff], spec[:, cutoff:]
    mag = np.sqrt(real ** 2 + imag ** 2)
    phase = np.arctan2(imag, real)
    rec = np.concatenate([mag * np.cos(phase), mag * np.sin(phase)], axis=1)
    t_out = filter_length + hop_length * (n_frames - 1)
    inv = np.zeros((B, t_out), np.float32)
    for b in range(B):
        for i in range(n_frames):
            inv[b, i * hop_length:i * hop_length + filter_length] += inverse_basis.T @ rec[b, :, i]
    wss = _window_sumsquare(fft_window, n_frames, hop_length, filter_length)
    nz = wss > np.finfo(np.float32).tiny
    inv[:, nz] /= wss[nz]
    inv *= filter_length / hop_length
    inv = inv[:, pad:t_out - pad]
    return inv.reshape(B, 1, -1), mag, phase


if __name__ == "__main__":
    key = jax.random.PRNGKey(0)
    B, S = 2, 64
    x = jax.random.normal(key, (B, S), dtype=jnp.float32)

    fwd_b, inv_b, win = _make_bases(FILTER_LENGTH, HOP_LENGTH, WIN_LENGTH)

    recon, mag, phase = stft_forward(x, fwd_b, inv_b, win, compute_mag_phase=True)
    recon = jax.block_until_ready(recon)

    ref_recon, ref_mag, ref_phase = stft_forward_ref(
        np.asarray(x), fwd_b, inv_b, win, FILTER_LENGTH, HOP_LENGTH)

    assert recon.shape == (B, 1, S), recon.shape
    assert np.all(np.isfinite(np.asarray(recon)))
    assert np.allclose(np.asarray(recon), ref_recon, atol=1e-3, rtol=1e-3)
    assert np.allclose(np.asarray(mag), ref_mag, atol=1e-3, rtol=1e-3)
    # compare phase via (cos, sin) to sidestep +/-pi wrap on numerically-zero bins
    assert np.allclose(np.cos(np.asarray(phase)), np.cos(ref_phase), atol=1e-3)
    assert np.allclose(np.sin(np.asarray(phase)), np.sin(ref_phase), atol=1e-3)

    # reconstruction-only fast path (single 16x16 recon matmul, no sqrt / arctan2)
    recon_only, _, _ = stft_forward(x, fwd_b, inv_b, win, compute_mag_phase=False)
    recon_only = jax.block_until_ready(recon_only)
    assert np.allclose(np.asarray(recon_only), ref_recon, atol=1e-3, rtol=1e-3)

    print("KERNEL_OK")
</pallas_src>

<mosaic_0001>
module attributes {stable_mosaic.version = 11 : i64} {
  func.func @kernel(%arg0: i32, %arg1: memref<2x4x128xf32, #tpu.memory_space<vmem>>, %arg2: memref<48x16xf32, #tpu.memory_space<vmem>>, %arg3: memref<4x128xf32, #tpu.memory_space<vmem>>, %arg4: memref<2x4x128xf32, #tpu.memory_space<vmem>>, %arg5: memref<2x16x128xf32, #tpu.memory_space<vmem>>, %arg6: memref<2x16x128xf32, #tpu.memory_space<vmem>>, %arg7: memref<16x128xf32, #tpu.memory_space<vmem>>) attributes {dimension_semantics = [#tpu.dimension_semantics<parallel>], iteration_bounds = array<i64: 1>, scalar_prefetch = 0 : i64, scratch_operands = 1 : i64, tpu.core_type = #tpu.core_type<tc>, window_params = [{transform_indices = @transform_0, window_bounds = array<i64: 2, 4, 128>}, {pipeline_mode = #tpu.pipeline_mode<synchronous>, transform_indices = @transform_1, window_bounds = array<i64: 48, 16>}, {pipeline_mode = #tpu.pipeline_mode<synchronous>, transform_indices = @transform_2, window_bounds = array<i64: 4, 128>}, {transform_indices = @transform_3, window_bounds = array<i64: 2, 4, 128>}, {transform_indices = @transform_4, window_bounds = array<i64: 2, 16, 128>}, {transform_indices = @transform_5, window_bounds = array<i64: 2, 16, 128>}]} {
    %0 = tpu.iota {dimensions = array<i32: 1>} : vector<1x128xi32>
    %c17_i32 = arith.constant 17 : i32
    %1 = vector.broadcast %c17_i32 : i32 to vector<1x128xi32>
    %2 = arith.cmpi slt, %0, %1 : vector<1x128xi32>
    %c0 = arith.constant 0 : index
    %c0_0 = arith.constant 0 : index
    %3 = vector.load %arg2[%c0, %c0_0] : memref<48x16xf32, #tpu.memory_space<vmem>>, vector<48x16xf32>
    %c0_1 = arith.constant 0 : index
    %c0_2 = arith.constant 0 : index
    %4 = vector.load %arg3[%c0_1, %c0_2] : memref<4x128xf32, #tpu.memory_space<vmem>>, vector<4x128xf32>
    %c0_3 = arith.constant 0 : index
    %c0_4 = arith.constant 0 : index
    %c0_5 = arith.constant 0 : index
    %5 = vector.load %arg1[%c0_3, %c0_4, %c0_5] : memref<2x4x128xf32, #tpu.memory_space<vmem>>, vector<1x4x128xf32>
    %6 = vector.shape_cast %5 : vector<1x4x128xf32> to vector<4x128xf32>
    %c0_6 = arith.constant 0 : index
    %c0_7 = arith.constant 0 : index
    %7 = vector.load %arg7[%c0_6, %c0_7] : memref<16x128xf32, #tpu.memory_space<vmem>>, vector<4x128xf32>
    tpu.vector_store %arg7[%c0_6, %c0_7], %6 {strides = array<i32>} : memref<16x128xf32, #tpu.memory_space<vmem>>, vector<4x128xf32>,
    %c127_i32 = arith.constant 127 : i32
    %8 = tpu.dynamic_rotate %6 by %c127_i32 dim 1 : vector<4x128xf32>, i32 -> vector<4x128xf32>
    %c4 = arith.constant 4 : index
    %c0_8 = arith.constant 0 : index
    %9 = vector.load %arg7[%c4, %c0_8] : memref<16x128xf32, #tpu.memory_space<vmem>>, vector<4x128xf32>
    tpu.vector_store %arg7[%c4, %c0_8], %8 {strides = array<i32>} : memref<16x128xf32, #tpu.memory_space<vmem>>, vector<4x128xf32>,
    %c126_i32 = arith.constant 126 : i32
    %10 = tpu.dynamic_rotate %6 by %c126_i32 dim 1 : vector<4x128xf32>, i32 -> vector<4x128xf32>
    %c8 = arith.constant 8 : index
    %c0_9 = arith.constant 0 : index
    %11 = vector.load %arg7[%c8, %c0_9] : memref<16x128xf32, #tpu.memory_space<vmem>>, vector<4x128xf32>
    tpu.vector_store %arg7[%c8, %c0_9], %10 {strides = array<i32>} : memref<16x128xf32, #tpu.memory_space<vmem>>, vector<4x128xf32>,
    %c125_i32 = arith.constant 125 : i32
    %12 = tpu.dynamic_rotate %6 by %c125_i32 dim 1 : vector<4x128xf32>, i32 -> vector<4x128xf32>
    %c12 = arith.constant 12 : index
    %c0_10 = arith.constant 0 : index
    %13 = vector.load %arg7[%c12, %c0_10] : memref<16x128xf32, #tpu.memory_space<vmem>>, vector<4x128xf32>
    tpu.vector_store %arg7[%c12, %c0_10], %12 {strides = array<i32>} : memref<16x128xf32, #tpu.memory_space<vmem>>, vector<4x128xf32>,
    %c0_11 = arith.constant 0 : index
    %c0_12 = arith.constant 0 : index
    %14 = vector.load %arg7[%c0_11, %c0_12] : memref<16x128xf32, #tpu.memory_space<vmem>>, vector<16x128xf32>
    %cst = arith.constant dense<0.000000e+00> : vector<48x128xf32>
    %15 = tpu.matmul %3, %14, %cst {dimension_numbers = #tpu.dot_dimension_numbers<[1], [0], [0], [1], [0, 0, 1, 1], [], []>} : vector<48x16xf32>, vector<16x128xf32>, vector<48x128xf32> -> vector<48x128xf32>
    %cst_13 = arith.constant 0.000000e+00 : f32
    %16 = vector.shape_cast %2 : vector<1x128xi1> to vector<1x128xi1>
    %17 = vector.broadcast %16 : vector<1x128xi1> to vector<48x128xi1>
    %18 = vector.broadcast %cst_13 : f32 to vector<48x128xf32>
    %19 = arith.select %17, %15, %18 : vector<48x128xi1>, vector<48x128xf32>
    %20 = vector.extract_strided_slice %19 {offsets = [0, 0], sizes = [16, 128], strides = [1, 1]} : vector<48x128xf32> to vector<16x128xf32>
    %21 = vector.extract_strided_slice %20 {offsets = [0, 0], sizes = [4, 128], strides = [1, 1]} : vector<16x128xf32> to vector<4x128xf32>
    %22 = vector.extract_strided_slice %20 {offsets = [4, 0], sizes = [4, 128], strides = [1, 1]} : vector<16x128xf32> to vector<4x128xf32>
    %c1_i32 = arith.constant 1 : i32
    %23 = tpu.dynamic_rotate %22 by %c1_i32 dim 1 : vector<4x128xf32>, i32 -> vector<4x128xf32>
    %24 = arith.addf %21, %23 : vector<4x128xf32>
    %25 = vector.extract_strided_slice %20 {offsets = [8, 0], sizes = [4, 128], strides = [1, 1]} : vector<16x128xf32> to vector<4x128xf32>
    %c2_i32 = arith.constant 2 : i32
    %26 = tpu.dynamic_rotate %25 by %c2_i32 dim 1 : vector<4x128xf32>, i32 -> vector<4x128xf32>
    %27 = arith.addf %24, %26 : vector<4x128xf32>
    %28 = vector.extract_strided_slice %20 {offsets = [12, 0], sizes = [4, 128], strides = [1, 1]} : vector<16x128xf32> to vector<4x128xf32>
    %c3_i32 = arith.constant 3 : i32
    %29 = tpu.dynamic_rotate %28 by %c3_i32 dim 1 : vector<4x128xf32>, i32 -> vector<4x128xf32>
    %30 = arith.addf %27, %29 : vector<4x128xf32>
    %31 = arith.mulf %30, %4 : vector<4x128xf32>
    %c0_14 = arith.constant 0 : index
    %c0_15 = arith.constant 0 : index
    %c0_16 = arith.constant 0 : index
    %32 = vector.load %arg4[%c0_14, %c0_15, %c0_16] : memref<2x4x128xf32, #tpu.memory_space<vmem>>, vector<1x4x128xf32>
    %33 = vector.shape_cast %32 : vector<1x4x128xf32> to vector<4x128xf32>
    %34 = vector.shape_cast %31 : vector<4x128xf32> to vector<1x4x128xf32>
    tpu.vector_store %arg4[%c0_14, %c0_15, %c0_16], %34 {strides = array<i32>} : memref<2x4x128xf32, #tpu.memory_space<vmem>>, vector<1x4x128xf32>,
    %35 = vector.extract_strided_slice %19 {offsets = [16, 0], sizes = [16, 128], strides = [1, 1]} : vector<48x128xf32> to vector<16x128xf32>
    %36 = vector.extract_strided_slice %19 {offsets = [32, 0], sizes = [16, 128], strides = [1, 1]} : vector<48x128xf32> to vector<16x128xf32>
    %37 = arith.mulf %35, %35 : vector<16x128xf32>
    %38 = arith.mulf %36, %36 : vector<16x128xf32>
    %39 = arith.addf %37, %38 : vector<16x128xf32>
    %40 = math.sqrt %39 : vector<16x128xf32>
    %c0_17 = arith.constant 0 : index
    %c0_18 = arith.constant 0 : index
    %c0_19 = arith.constant 0 : index
    %41 = vector.load %arg5[%c0_17, %c0_18, %c0_19] : memref<2x16x128xf32, #tpu.memory_space<vmem>>, vector<1x16x128xf32>
    %42 = vector.shape_cast %41 : vector<1x16x128xf32> to vector<16x128xf32>
    %43 = vector.shape_cast %40 : vector<16x128xf32> to vector<1x16x128xf32>
    tpu.vector_store %arg5[%c0_17, %c0_18, %c0_19], %43 {strides = array<i32>} : memref<2x16x128xf32, #tpu.memory_space<vmem>>, vector<1x16x128xf32>,
    %44 = math.atan2 %36, %35 : vector<16x128xf32>
    %c0_20 = arith.constant 0 : index
    %c0_21 = arith.constant 0 : index
    %c0_22 = arith.constant 0 : index
    %45 = vector.load %arg6[%c0_20, %c0_21, %c0_22] : memref<2x16x128xf32, #tpu.memory_space<vmem>>, vector<1x16x128xf32>
    %46 = vector.shape_cast %45 : vector<1x16x128xf32> to vector<16x128xf32>
    %47 = vector.shape_cast %44 : vector<16x128xf32> to vector<1x16x128xf32>
    tpu.vector_store %arg6[%c0_20, %c0_21, %c0_22], %47 {strides = array<i32>} : memref<2x16x128xf32, #tpu.memory_space<vmem>>, vector<1x16x128xf32>,
    %c1 = arith.constant 1 : index
    %c0_23 = arith.constant 0 : index
    %c0_24 = arith.constant 0 : index
    %48 = vector.load %arg1[%c1, %c0_23, %c0_24] : memref<2x4x128xf32, #tpu.memory_space<vmem>>, vector<1x4x128xf32>
    %49 = vector.shape_cast %48 : vector<1x4x128xf32> to vector<4x128xf32>
    %c0_25 = arith.constant 0 : index
    %c0_26 = arith.constant 0 : index
    %50 = vector.load %arg7[%c0_25, %c0_26] : memref<16x128xf32, #tpu.memory_space<vmem>>, vector<4x128xf32>
    tpu.vector_store %arg7[%c0_25, %c0_26], %49 {strides = array<i32>} : memref<16x128xf32, #tpu.memory_space<vmem>>, vector<4x128xf32>,
    %c127_i32_27 = arith.constant 127 : i32
    %51 = tpu.dynamic_rotate %49 by %c127_i32_27 dim 1 : vector<4x128xf32>, i32 -> vector<4x128xf32>
    %c4_28 = arith.constant 4 : index
    %c0_29 = arith.constant 0 : index
    %52 = vector.load %arg7[%c4_28, %c0_29] : memref<16x128xf32, #tpu.memory_space<vmem>>, vector<4x128xf32>
    tpu.vector_store %arg7[%c4_28, %c0_29], %51 {strides = array<i32>} : memref<16x128xf32, #tpu.memory_space<vmem>>, vector<4x128xf32>,
    %c126_i32_30 = arith.constant 126 : i32
    %53 = tpu.dynamic_rotate %49 by %c126_i32_30 dim 1 : vector<4x128xf32>, i32 -> vector<4x128xf32>
    %c8_31 = arith.constant 8 : index
    %c0_32 = arith.constant 0 : index
    %54 = vector.load %arg7[%c8_31, %c0_32] : memref<16x128xf32, #tpu.memory_space<vmem>>, vector<4x128xf32>
    tpu.vector_store %arg7[%c8_31, %c0_32], %53 {strides = array<i32>} : memref<16x128xf32, #tpu.memory_space<vmem>>, vector<4x128xf32>,
    %c125_i32_33 = arith.constant 125 : i32
    %55 = tpu.dynamic_rotate %49 by %c125_i32_33 dim 1 : vector<4x128xf32>, i32 -> vector<4x128xf32>
    %c12_34 = arith.constant 12 : index
    %c0_35 = arith.constant 0 : index
    %56 = vector.load %arg7[%c12_34, %c0_35] : memref<16x128xf32, #tpu.memory_space<vmem>>, vector<4x128xf32>
    tpu.vector_store %arg7[%c12_34, %c0_35], %55 {strides = array<i32>} : memref<16x128xf32, #tpu.memory_space<vmem>>, vector<4x128xf32>,
    %c0_36 = arith.constant 0 : index
    %c0_37 = arith.constant 0 : index
    %57 = vector.load %arg7[%c0_36, %c0_37] : memref<16x128xf32, #tpu.memory_space<vmem>>, vector<16x128xf32>
    %cst_38 = arith.constant dense<0.000000e+00> : vector<48x128xf32>
    %58 = tpu.matmul %3, %57, %cst_38 {dimension_numbers = #tpu.dot_dimension_numbers<[1], [0], [0], [1], [0, 0, 1, 1], [], []>} : vector<48x16xf32>, vector<16x128xf32>, vector<48x128xf32> -> vector<48x128xf32>
    %cst_39 = arith.constant 0.000000e+00 : f32
    %59 = vector.shape_cast %2 : vector<1x128xi1> to vector<1x128xi1>
    %60 = vector.broadcast %59 : vector<1x128xi1> to vector<48x128xi1>
    %61 = vector.broadcast %cst_39 : f32 to vector<48x128xf32>
    %62 = arith.select %60, %58, %61 : vector<48x128xi1>, vector<48x128xf32>
    %63 = vector.extract_strided_slice %62 {offsets = [0, 0], sizes = [16, 128], strides = [1, 1]} : vector<48x128xf32> to vector<16x128xf32>
    %64 = vector.extract_strided_slice %63 {offsets = [0, 0], sizes = [4, 128], strides = [1, 1]} : vector<16x128xf32> to vector<4x128xf32>
    %65 = vector.extract_strided_slice %63 {offsets = [4, 0], sizes = [4, 128], strides = [1, 1]} : vector<16x128xf32> to vector<4x128xf32>
    %c1_i32_40 = arith.constant 1 : i32
    %66 = tpu.dynamic_rotate %65 by %c1_i32_40 dim 1 : vector<4x128xf32>, i32 -> vector<4x128xf32>
    %67 = arith.addf %64, %66 : vector<4x128xf32>
    %68 = vector.extract_strided_slice %63 {offsets = [8, 0], sizes = [4, 128], strides = [1, 1]} : vector<16x128xf32> to vector<4x128xf32>
    %c2_i32_41 = arith.constant 2 : i32
    %69 = tpu.dynamic_rotate %68 by %c2_i32_41 dim 1 : vector<4x128xf32>, i32 -> vector<4x128xf32>
    %70 = arith.addf %67, %69 : vector<4x128xf32>
    %71 = vector.extract_strided_slice %63 {offsets = [12, 0], sizes = [4, 128], strides = [1, 1]} : vector<16x128xf32> to vector<4x128xf32>
    %c3_i32_42 = arith.constant 3 : i32
    %72 = tpu.dynamic_rotate %71 by %c3_i32_42 dim 1 : vector<4x128xf32>, i32 -> vector<4x128xf32>
    %73 = arith.addf %70, %72 : vector<4x128xf32>
    %74 = arith.mulf %73, %4 : vector<4x128xf32>
    %c1_43 = arith.constant 1 : index
    %c0_44 = arith.constant 0 : index
    %c0_45 = arith.constant 0 : index
    %75 = vector.load %arg4[%c1_43, %c0_44, %c0_45] : memref<2x4x128xf32, #tpu.memory_space<vmem>>, vector<1x4x128xf32>
    %76 = vector.shape_cast %75 : vector<1x4x128xf32> to vector<4x128xf32>
    %77 = vector.shape_cast %74 : vector<4x128xf32> to vector<1x4x128xf32>
    tpu.vector_store %arg4[%c1_43, %c0_44, %c0_45], %77 {strides = array<i32>} : memref<2x4x128xf32, #tpu.memory_space<vmem>>, vector<1x4x128xf32>,
    %78 = vector.extract_strided_slice %62 {offsets = [16, 0], sizes = [16, 128], strides = [1, 1]} : vector<48x128xf32> to vector<16x128xf32>
    %79 = vector.extract_strided_slice %62 {offsets = [32, 0], sizes = [16, 128], strides = [1, 1]} : vector<48x128xf32> to vector<16x128xf32>
    %80 = arith.mulf %78, %78 : vector<16x128xf32>
    %81 = arith.mulf %79, %79 : vector<16x128xf32>
    %82 = arith.addf %80, %81 : vector<16x128xf32>
    %83 = math.sqrt %82 : vector<16x128xf32>
    %c1_46 = arith.constant 1 : index
    %c0_47 = arith.constant 0 : index
    %c0_48 = arith.constant 0 : index
    %84 = vector.load %arg5[%c1_46, %c0_47, %c0_48] : memref<2x16x128xf32, #tpu.memory_space<vmem>>, vector<1x16x128xf32>
    %85 = vector.shape_cast %84 : vector<1x16x128xf32> to vector<16x128xf32>
    %86 = vector.shape_cast %83 : vector<16x128xf32> to vector<1x16x128xf32>
    tpu.vector_store %arg5[%c1_46, %c0_47, %c0_48], %86 {strides = array<i32>} : memref<2x16x128xf32, #tpu.memory_space<vmem>>, vector<1x16x128xf32>,
    %87 = math.atan2 %79, %78 : vector<16x128xf32>
    %c1_49 = arith.constant 1 : index
    %c0_50 = arith.constant 0 : index
    %c0_51 = arith.constant 0 : index
    %88 = vector.load %arg6[%c1_49, %c0_50, %c0_51] : memref<2x16x128xf32, #tpu.memory_space<vmem>>, vector<1x16x128xf32>
    %89 = vector.shape_cast %88 : vector<1x16x128xf32> to vector<16x128xf32>
    %90 = vector.shape_cast %87 : vector<16x128xf32> to vector<1x16x128xf32>
    tpu.vector_store %arg6[%c1_49, %c0_50, %c0_51], %90 {strides = array<i32>} : memref<2x16x128xf32, #tpu.memory_space<vmem>>, vector<1x16x128xf32>,
    return
  }
  func.func @transform_0(%arg0: i32) -> (i32, i32, i32) {
    %c0_i32 = arith.constant 0 : i32
    %c0_i32_0 = arith.constant 0 : i32
    %c0_i32_1 = arith.constant 0 : i32
    return %arg0, %c0_i32, %c0_i32_0 : i32, i32, i32
  }
  func.func @transform_1(%arg0: i32) -> (i32, i32) {
    %c0_i32 = arith.constant 0 : i32
    %c0_i32_0 = arith.constant 0 : i32
    %c0_i32_1 = arith.constant 0 : i32
    return %c0_i32, %c0_i32_0 : i32, i32
  }
  func.func @transform_2(%arg0: i32) -> (i32, i32) {
    %c0_i32 = arith.constant 0 : i32
    %c0_i32_0 = arith.constant 0 : i32
    %c0_i32_1 = arith.constant 0 : i32
    return %c0_i32, %c0_i32_0 : i32, i32
  }
  func.func @transform_3(%arg0: i32) -> (i32, i32, i32) {
    %c0_i32 = arith.constant 0 : i32
    %c0_i32_0 = arith.constant 0 : i32
    %c0_i32_1 = arith.constant 0 : i32
    return %arg0, %c0_i32, %c0_i32_0 : i32, i32, i32
  }
  func.func @transform_4(%arg0: i32) -> (i32, i32, i32) {
    %c0_i32 = arith.constant 0 : i32
    %c0_i32_0 = arith.constant 0 : i32
    %c0_i32_1 = arith.constant 0 : i32
    return %arg0, %c0_i32, %c0_i32_0 : i32, i32, i32
  }
  func.func @transform_5(%arg0: i32) -> (i32, i32, i32) {
    %c0_i32 = arith.constant 0 : i32
    %c0_i32_0 = arith.constant 0 : i32
    %c0_i32_1 = arith.constant 0 : i32
    return %arg0, %c0_i32, %c0_i32_0 : i32, i32, i32
  }
}

</mosaic_0001>

<bundles_post_ra>
// kernel: tpu_custom_call.1
= control target key start
LH: loop header
LB: loop body
LE: loop exit
PB: predicated region body
PF: predicated region fallthrough
CT: control target
= control target key end

     0   :  { %11 = vsyncpa [#allocation4], 0  ;;  %s763_s20 = smov 127   ;;  %s764_s21 = smov 125   ;;  %s1220_s0 = inlined_call_operand.vmem [shape: f32[2,4,128], index: 0, kind: input, shape index: {}]   ;;  %s1221_s1 = inlined_call_operand.vmem [shape: f32[48,16], index: 1, kind: input, shape index: {}]   ;;  %s1222_s2 = inlined_call_operand.vmem [shape: f32[4,128], index: 2, kind: input, shape index: {}]   ;;  %s1223_s3 = inlined_call_operand.hbm [shape: f32[2,4,128], index: 3, kind: output, shape index: {0}]   ;;  %s1224_s4 = inlined_call_operand.hbm [shape: f32[2,16,128], index: 4, kind: output, shape index: {1}]   ;;  %s1225_s5 = inlined_call_operand.hbm [shape: f32[2,16,128], index: 5, kind: output, shape index: {2}]  }
   0x1   :  { %v29_v0 = vld [vmem:[%s1220_s0] sm:$0xf] }
   0x2   :  { %31 = vrot.lane.b32.xlu0 %v29_v0, %s763_s20  ;;  %30 = vst [vmem:[#allocation2] sm:$0xf] %v29_v0  ;;  %37 = vrot.lane.b32.xlu1 %v29_v0, %s764_s21 }
   0x3   :  { %12 = vsyncpa [#allocation6], 0  ;;  %v605_v1 = vld [vmem:[%s1220_s0 + $0x4] sm:$0xf]  ;;  %vm42_vm0 = vcmask 130048   ;;  %s765_s26 = smov 126   ;;  %v19_v20 = vlaneseq }
   0x4   :  { %v22_v2 = vld [vmem:[%s1221_s1] sm:$0xff]  ;;  %v23_v12 = vld [vmem:[%s1221_s1 + $0x8] sm:$0xff]  ;;  %v24_v13 = vld [vmem:[%s1221_s1 + $0x10] sm:$0xff]  ;;  %s767_s11 = smov 1   ;;  %s768_s12 = smov 3  }
   0x5   :  { %632 = vmatprep.mubr.msk.f32.mxu0 %vm42_vm0, %v22_v2  ;;  %645 = vmatprep.mubr.msk.f32.mxu1 %vm42_vm0, %v22_v2  ;;  %v25_v14 = vld [vmem:[%s1221_s1 + $0x18] sm:$0xff]  ;;  %v26_v18 = vld [vmem:[%s1221_s1 + $0x20] sm:$0xff]  ;;  %v27_v19 = vld [vmem:[%s1221_s1 + $0x28] sm:$0xff]  ;;  %v844_v21 = vand.u32 127, %v19_v20  ;;  %s766_s1 = smov 2   ;;  %s769_s13 = smov [#allocation5]  }
   0x6   :  { %34 = vrot.lane.b32.xlu0 %v29_v0, %s765_s26  ;;  %302 = vrot.lane.b32.xlu1 %v605_v1, %s763_s20  ;;  %s569_s14 = sshll.u32 %s769_s13, 4  ;;  %s570_s14 = int_to_ptr.vmem [resolvable:$true] %s569_s14 }
   0x7   :  { %vm21_vm1 = vcmp.lt.s32.totalorder %v844_v21, 17  ;;  %s693_s15 = scalar_lea.vmem %s570_s14, 512  ;;  %p698_p1 = scmp.lt.s32.totalorder %s570_s14, %s570_s14 }
   0x8   :  { %p694_p0 = scmp.ne.s32.totalorder %s570_s14, %s693_s15  ;;  %p699_p2 = scmp.lt.s32.totalorder %s693_s15, %s693_s15 }
   0xa   :  { %308 = vrot.lane.b32.xlu1 %v605_v1, %s764_s21  ;;  %305 = vrot.lane.b32.xlu0 %v605_v1, %s765_s26  ;;  %p700_p3 = por %p699_p2, %p698_p1 }
   0xc   :  { %p701_p4 = pnand %p700_p3, %p694_p0 }
  0x74   :  { %v32_v3 = vpop.permute.xlu0 %31  ;;  %v38_v4 = vpop.permute.xlu1 %37 }
  0x75   :  { %33 = vst [vmem:[#allocation2 + $0x4] sm:$0xf] %v32_v3  ;;  %39 = vst [vmem:[#allocation2 + $0xc] sm:$0xf] %v38_v4 }
  0x78   :  { %v35_v5 = vpop.permute.xlu0 %34  ;;  %v303_v6 = vpop.permute.xlu1 %302 }
  0x79   :  { %36 = vst [vmem:[#allocation2 + $0x8] sm:$0xf] %v35_v5 }
  0x7c   :  { %v40_v7 = vld [vmem:[#allocation2] sm:$0xff]  ;;  %v309_v8 = vpop.permute.xlu1 %308  ;;  %v306_v9 = vpop.permute.xlu0 %305 }
  0x7d   :  { %301 = vst [vmem:[#allocation2] sm:$0xf] %v605_v1  ;;  %304 = vst [vmem:[#allocation2 + $0x4] sm:$0xf] %v303_v6 }
  0x80   :  { %v41_v10 = vld [vmem:[#allocation2 + $0x8] sm:$0xff] }
  0x81   :  { %310 = vst [vmem:[#allocation2 + $0xc] sm:$0xf] %v309_v8  ;;  %307 = vst [vmem:[#allocation2 + $0x8] sm:$0xf] %v306_v9  ;;  %v654_v11 = vpack.c.bf16 %v41_v10, %v40_v7 }
  0x83   :  { %655 = vmatprep.subr.bf16.mxu0 %v654_v11 }
  0x84   :  { %657 = vmatpush3.bf16.msra.mxu0 %v654_v11  ;;  %v311_v15 = vld [vmem:[#allocation2] sm:$0xff] }
  0x87   :  { %633 = vmatmul.mubr.msk.f32.vlgmr.msra.gmra.mrb[0].mxu0 %vm42_vm0, %v23_v12 }
  0x88   :  { %635 = vmatprep.mubr.msk.f32.mxu0 %vm42_vm0, %v24_v13  ;;  %v312_v16 = vld [vmem:[#allocation2 + $0x8] sm:$0xff] }
  0x89   :  { %v658_v17 = vpack.c.bf16 %v312_v16, %v311_v15 }
  0x8b   :  { %636 = vmatmul.mubr.msk.f32.gmra.mrb[2].mxu0 %vm42_vm0, %v25_v14  ;;  %659 = vmatprep.subr.bf16.mxu1 %v658_v17 }
  0x8c   :  { %661 = vmatpush3.bf16.msra.mxu1 %v658_v17  ;;  %638 = vmatprep.mubr.msk.f32.mxu0 %vm42_vm0, %v26_v18 }
  0x8f   :  { %639 = vmatmul.mubr.msk.f32.gmra.mrb[4].mxu0 %vm42_vm0, %v27_v19  ;;  %646 = vmatmul.mubr.msk.f32.vlgmr.msra.gmra.mrb[0].mxu1 %vm42_vm0, %v23_v12 }
  0x90   :  { %648 = vmatprep.mubr.msk.f32.mxu1 %vm42_vm0, %v24_v13 }
  0x93   :  { %649 = vmatmul.mubr.msk.f32.gmra.mrb[2].mxu1 %vm42_vm0, %v25_v14 }
  0x94   :  { %651 = vmatprep.mubr.msk.f32.mxu1 %vm42_vm0, %v26_v18 }
  0x97   :  { %652 = vmatmul.mubr.msk.f32.gmra.mrb[4].mxu1 %vm42_vm0, %v27_v19 }
 0x15a   :  { %v634_v22 = vpop.f32.mrb[0].mxu0 }
 0x15b   :  { %v159_v23 = vsel %vm21_vm1, %v634_v22, 0.0  ;;  %v127_v24 = vpop.f32.mrb[1].mxu0 }
 0x15c   :  { %v851_v25 = vsel %vm21_vm1, %v127_v24, 0.0  ;;  %170 = vrot.lane.b32.xlu0 %v159_v23, %s766_s1  ;;  %v174_v30 = vrot.slane %v159_v23, 4 }
 0x15d   :  { %v165_v26 = vrot.slane %v851_v25, 4 }
 0x15e   :  { %v637_v27 = vpop.f32.mrb[2].mxu0 }
 0x15f   :  { %v857_v28 = vsel %vm21_vm1, %v637_v27, 0.0  ;;  %v137_v29 = vpop.f32.mrb[3].mxu0 }
 0x160   :  { %167 = vrot.lane.b32.xlu0 %v165_v26, %s767_s11  ;;  %v862_v31 = vsel %vm21_vm1, %v137_v29, 0.0  ;;  %v182_v32 = vmul.f32 %v857_v28, %v857_v28  ;;  %v867_v33 = vand.u32 2147483647, %v857_v28  ;;  %vm284_vm2 = vcmp.ne.f32.partialorder %v857_v28, %v857_v28 }
 0x161   :  { %v181_v36 = vmul.f32 %v862_v31, %v862_v31  ;;  %v878_v39 = vand.u32 2147483647, %v862_v31  ;;  %vm237_vm4 = vcmp.ne.f32.partialorder %v862_v31, %v862_v31 }
 0x162   :  { %v640_v34 = vpop.f32.mrb[4].mxu0  ;;  %v647_v35 = vpop.f32.mrb[0].mxu1  ;;  %vm290_vm6 = vcmp.eq.s32.totalorder %v867_v33, inf }
 0x163   :  { %v875_v37 = vsel %vm21_vm1, %v640_v34, 0.0  ;;  %v147_v38 = vpop.f32.mrb[5].mxu0  ;;  %v379_v42 = vpop.f32.mrb[1].mxu1  ;;  %v409_v44 = vsel %vm21_vm1, %v647_v35, 0.0  ;;  %vm243_vm11 = vcmp.eq.s32.totalorder %v878_v39, inf }
 0x164   :  { %v184_v40 = vmul.f32 %v875_v37, %v875_v37  ;;  %v883_v41 = vand.u32 2147483647, %v875_v37  ;;  %vm285_vm3 = vcmp.ne.f32.partialorder %v875_v37, %v875_v37  ;;  %176 = vrot.lane.b32.xlu0 %v174_v30, %s768_s12  ;;  %v899_v45 = vsel %vm21_vm1, %v147_v38, 0.0  ;;  %420 = vrot.lane.b32.xlu1 %v409_v44, %s766_s1 }
 0x165   :  { %vm890_vm5 = vmor %vm284_vm2, %vm285_vm3  ;;  %v183_v50 = vmul.f32 %v899_v45, %v899_v45  ;;  %v914_v51 = vand.u32 2147483647, %v899_v45  ;;  %vm238_vm10 = vcmp.ne.f32.partialorder %v899_v45, %v899_v45  ;;  %v942_v58 = vsel %vm21_vm1, %v379_v42, 0.0 }
 0x166   :  { %v901_v46 = vadd.f32 %v184_v40, %v182_v32  ;;  %v252_v47 = vmin.f32 %v867_v33, %v883_v41  ;;  %v253_v48 = vmax.f32 %v867_v33, %v883_v41  ;;  %vm274_vm7 = vcmp.gt.f32.partialorder %v883_v41, %v867_v33  ;;  %v650_v49 = vpop.f32.mrb[2].mxu1  ;;  %vm932_vm12 = vmor %vm237_vm4, %vm238_vm10 }
 0x167   :  { %vm291_vm8 = vcmp.eq.s32.totalorder %v883_v41, inf  ;;  %v389_v52 = vpop.f32.mrb[3].mxu1  ;;  %v923_v54 = vadd.f32 %v183_v50, %v181_v36  ;;  %v205_v55 = vmin.f32 %v878_v39, %v914_v51  ;;  %v206_v56 = vmax.f32 %v878_v39, %v914_v51 }
 0x168   :  { %vm916_vm9 = vmand %vm290_vm6, %vm291_vm8  ;;  %677 = vrcp.f32 %v253_v48  ;;  %vm227_vm13 = vcmp.gt.f32.partialorder %v914_v51, %v878_v39  ;;  %vm244_vm14 = vcmp.eq.s32.totalorder %v914_v51, inf  ;;  %v415_v61 = vrot.slane %v942_v58, 4 }
 0x169   :  { %679 = vrsqrt.f32 %v901_v46  ;;  %vm945_vm15 = vmand %vm243_vm11, %vm244_vm14  ;;  %v952_v62 = vsel %vm21_vm1, %v650_v49, 0.0  ;;  %v964_v2 = vsel %vm21_vm1, %v389_v52, 0.0  ;;  %v424_v3 = vrot.slane %v409_v44, 4 }
 0x16a   :  { %v653_v59 = vpop.f32.mrb[4].mxu1  ;;  %681 = vrsqrt.f32 %v923_v54  ;;  %417 = vrot.lane.b32.xlu1 %v415_v61, %s767_s11  ;;  %v433_v0 = vmul.f32 %v952_v62, %v952_v62  ;;  %v958_v1 = vand.u32 2147483647, %v952_v62  ;;  %vm536_vm0 = vcmp.ne.f32.partialorder %v952_v62, %v952_v62 }
 0x16b   :  { %v399_v63 = vpop.f32.mrb[5].mxu1  ;;  %683 = vrcp.f32 %v206_v56  ;;  %v968_v4 = vsel %vm21_vm1, %v653_v59, 0.0  ;;  %v432_v5 = vmul.f32 %v964_v2, %v964_v2  ;;  %v980_v8 = vand.u32 2147483647, %v964_v2 }
 0x16c   :  { %v435_v6 = vmul.f32 %v968_v4, %v968_v4  ;;  %v975_v7 = vand.u32 2147483647, %v968_v4  ;;  %vm537_vm2 = vcmp.ne.f32.partialorder %v968_v4, %v968_v4  ;;  %vm489_vm3 = vcmp.ne.f32.partialorder %v964_v2, %v964_v2 }
 0x16d   :  { %vm984_vm4 = vmor %vm536_vm0, %vm537_vm2  ;;  %vm542_vm6 = vcmp.eq.s32.totalorder %v958_v1, inf  ;;  %v991_v10 = vsel %vm21_vm1, %v399_v63, 0.0  ;;  %vm495_vm14 = vcmp.eq.s32.totalorder %v980_v8, inf  ;;  %v192_v36 = vand.u32 2147483648, %v923_v54 }
 0x16e   :  { %426 = vrot.lane.b32.xlu1 %v424_v3, %s768_s12  ;;  %v994_v11 = vadd.f32 %v435_v6, %v433_v0  ;;  %v504_v12 = vmin.f32 %v958_v1, %v975_v7  ;;  %v505_v13 = vmax.f32 %v958_v1, %v975_v7  ;;  %vm526_vm8 = vcmp.gt.f32.partialorder %v975_v7, %v958_v1 }
 0x16f   :  { %vm543_vm10 = vcmp.eq.s32.totalorder %v975_v7, inf  ;;  %v434_v15 = vmul.f32 %v991_v10, %v991_v10  ;;  %v1006_v16 = vand.u32 2147483647, %v991_v10  ;;  %vm490_vm11 = vcmp.ne.f32.partialorder %v991_v10, %v991_v10 }
 0x170   :  { %685 = vrsqrt.f32 %v994_v11  ;;  %vm1011_vm1 = vmand %vm542_vm6, %vm543_vm10  ;;  %vm189_vm10 = vcmp.eq.f32.partialorder %v923_v54, inf  ;;  %v450_v59 = vand.u32 2147483648, %v994_v11 }
 0x171   :  { %687 = vrcp.f32 %v505_v13  ;;  %v1018_v21 = vadd.f32 %v434_v15, %v432_v5  ;;  %v457_v22 = vmin.f32 %v980_v8, %v1006_v16  ;;  %v458_v23 = vmax.f32 %v980_v8, %v1006_v16  ;;  %vm1027_vm0 = vmor %vm489_vm3, %vm490_vm11 }
 0x172   :  { %v678_v14 = vpop.eup %677  ;;  %vm479_vm2 = vcmp.gt.f32.partialorder %v1006_v16, %v980_v8  ;;  %vm496_vm6 = vcmp.eq.s32.totalorder %v1006_v16, inf  ;;  %vm191_vm11 = vcmp.eq.f32.partialorder %v923_v54, 0.0 }
 0x173   :  { %v680_v17 = vpop.eup %679  ;;  %v1008_v18 = vmul.f32 %v678_v14, %v252_v47  ;;  %689 = vrsqrt.f32 %v1018_v21  ;;  %vm1042_vm3 = vmand %vm495_vm14, %vm496_vm6  ;;  %vm196_vm14 = vcmp.eq.f32.partialorder %v901_v46, inf  ;;  %vm198_vm6 = vcmp.eq.f32.partialorder %v901_v46, 0.0 }
 0x174   :  { %v682_v20 = vpop.eup %681  ;;  %691 = vrcp.f32 %v458_v23  ;;  %v195_v40 = vmul.f32 %v680_v17, %v901_v46  ;;  %v199_v47 = vand.u32 2147483648, %v901_v46  ;;  %v443_v13 = vand.u32 2147483648, %v1018_v21 }
 0x175   :  { %v684_v26 = vpop.eup %683  ;;  %v1033_v27 = vmul.f32 %v1008_v18, %v1008_v18  ;;  %v188_v29 = vmul.f32 %v682_v20, %v923_v54 }
 0x176   :  { %v1039_v30 = vmul.f32 %v684_v26, %v205_v55  ;;  %v197_v49 = vsel %vm196_vm14, %v901_v46, %v195_v40  ;;  %vm440_vm14 = vcmp.eq.f32.partialorder %v1018_v21, inf }
 0x177   :  { %v257_v34 = vmul.f32 0.002785687, %v1033_v27  ;;  %v190_v35 = vsel %vm189_vm10, %v923_v54, %v188_v29  ;;  %v200_v52 = vsel %vm198_vm6, %v199_v47, %v197_v49  ;;  %vm447_vm10 = vcmp.eq.f32.partialorder %v994_v11, inf }
 0x178   :  { %v1053_v38 = vmul.f32 %v1039_v30, %v1039_v30  ;;  %v193_v44 = vsel %vm191_vm11, %v192_v36, %v190_v35  ;;  %202 = vst [vmem:[#allocation5 + $0x8] sm:$0xff] %v200_v52  ;;  %vm449_vm11 = vcmp.eq.f32.partialorder %v994_v11, 0.0  ;;  %vm442_vm6 = vcmp.eq.f32.partialorder %v1018_v21, 0.0 }
 0x179   :  { %v258_v42 = vadd.f32 -0.015866, %v257_v34  ;;  %201 = vst [vmem:[#allocation5] sm:$0xff] %v193_v44 }
 0x17a   :  { %v210_v48 = vmul.f32 0.002785687, %v1053_v38  ;;  %v686_v55 = vpop.eup %685 }
 0x17b   :  { %v259_v50 = vmul.f32 %v258_v42, %v1033_v27  ;;  %v688_v61 = vpop.eup %687  ;;  %v446_v0 = vmul.f32 %v686_v55, %v994_v11 }
 0x17c   :  { %v211_v54 = vadd.f32 -0.015866, %v210_v48  ;;  %v1068_v3 = vmul.f32 %v688_v61, %v504_v12 }
 0x17d   :  { %v260_v56 = vadd.f32 0.04247222, %v259_v50  ;;  %v690_v5 = vpop.eup %689  ;;  %v448_v14 = vsel %vm447_vm10, %v994_v11, %v446_v0 }
 0x17e   :  { %v212_v63 = vmul.f32 %v211_v54, %v1053_v38  ;;  %v692_v15 = vpop.eup %691  ;;  %v1076_v20 = vmul.f32 %v1068_v3, %v1068_v3  ;;  %v439_v12 = vmul.f32 %v690_v5, %v1018_v21  ;;  %v451_v23 = vsel %vm449_vm11, %v450_v59, %v448_v14 }
 0x17f   :  { %v261_v46 = vmul.f32 %v260_v56, %v1033_v27  ;;  %v1080_v29 = vmul.f32 %v692_v15, %v457_v22  ;;  %454 = vst [vmem:[#allocation5 + $0x18] sm:$0xff] %v451_v23 }
 0x180   :  { %v213_v6 = vadd.f32 0.04247222, %v212_v63  ;;  %v509_v11 = vmul.f32 0.002785687, %v1076_v20  ;;  %v441_v35 = vsel %vm440_vm14, %v1018_v21, %v439_v12 }
 0x181   :  { %v262_v17 = vadd.f32 -0.074975304, %v261_v46  ;;  %v1089_v40 = vmul.f32 %v1080_v29, %v1080_v29  ;;  %v444_v42 = vsel %vm442_vm6, %v443_v13, %v441_v35 }
 0x182   :  { %v214_v26 = vmul.f32 %v213_v6, %v1053_v38  ;;  %v510_v44 = vadd.f32 -0.015866, %v509_v11  ;;  %453 = vst [vmem:[#allocation5 + $0x10] sm:$0xff] %v444_v42 }
 0x183   :  { %v263_v34 = vmul.f32 %v262_v17, %v1033_v27  ;;  %v462_v48 = vmul.f32 0.002785687, %v1089_v40 }
 0x184   :  { %v215_v36 = vadd.f32 -0.074975304, %v214_v26 }
 0x185   :  { %v264_v22 = vadd.f32 0.1064488, %v263_v34 }
 0x186   :  { %v216_v47 = vmul.f32 %v215_v36, %v1053_v38 }
 0x187   :  { %704 = shalt.err (!%p701_p4)
}
 0x188   :  { %s705_s18 = scalar_lea.hbm %s1224_s4, 512 }
 0x189   :  { %p706_p5 = scmp.ne.s32.totalorder %s1224_s4, %s705_s18  ;;  %p709_p6 = scmp.lt.u32.totalorder %s705_s18, %s1224_s4 }
 0x18b   :  { %p711_p7 = pnand %p709_p6, %p706_p5 }
 0x18d   :  { %714 = shalt.err (!%p711_p7)
}
 0x18e   :  { %s770_s23 = smov 128   ;;  %s771_s24 = smov 8   ;;  %v265_v21 = vmul.f32 %v264_v22, %v1033_v27  ;;  %v511_v49 = vmul.f32 %v510_v44, %v1076_v20  ;;  %v217_v50 = vadd.f32 0.1064488, %v216_v47  ;;  %v463_v52 = vadd.f32 -0.015866, %v462_v48 }
 0x18f   :  { %575 = dma.vmem_to_hbm [thread:$0]  %s570_s14, 512, %s1224_s4, [#allocation6], %s770_s23, %s770_s23, %s771_s24   ;;  %vm280_vm10 = vcmp.lt.s32.totalorder %v857_v28, 0  ;;  %vm277_vm11 = vcmp.lt.f32.partialorder %v857_v28, 0.0  ;;  %vm282_vm14 = vcmp.eq.f32.partialorder %v875_v37, 0.0  ;;  %vm233_vm6 = vcmp.lt.s32.totalorder %v862_v31, 0 }
 0x190   :  { %v266_v54 = vadd.f32 -0.14207031, %v265_v21  ;;  %v512_v55 = vadd.f32 0.04247222, %v511_v49  ;;  %v218_v56 = vmul.f32 %v217_v50, %v1053_v38  ;;  %v464_v59 = vmul.f32 %v463_v52, %v1089_v40  ;;  %s774_s4 = smov [#allocation7]  }
 0x191   :  { %s581_s0 = sshll.u32 %s774_s4, 4  ;;  %v500_v19 = vand.u32 2147483648, %v991_v10  ;;  %s582_s0 = int_to_ptr.vmem [resolvable:$true] %s581_s0 }
 0x192   :  { %v267_v61 = vmul.f32 %v266_v54, %v1033_v27  ;;  %v513_v63 = vmul.f32 %v512_v55, %v1076_v20  ;;  %v219_v0 = vadd.f32 -0.14207031, %v218_v56  ;;  %v465_v46 = vadd.f32 0.04247222, %v464_v59  ;;  %s715_s27 = scalar_lea.vmem %s582_s0, 512  ;;  %p720_p9 = scmp.lt.s32.totalorder %s582_s0, %s582_s0 }
 0x193   :  { %p716_p8 = scmp.ne.s32.totalorder %s582_s0, %s715_s27  ;;  %p721_p10 = scmp.lt.s32.totalorder %s715_s27, %s715_s27 }
 0x194   :  { %v268_v5 = vadd.f32 0.19993454, %v267_v61  ;;  %v514_v6 = vadd.f32 -0.074975304, %v513_v63  ;;  %v220_v13 = vmul.f32 %v219_v0, %v1053_v38  ;;  %v466_v14 = vmul.f32 %v465_v46, %v1089_v40 }
 0x195   :  { %p722_p11 = por %p721_p10, %p720_p9 }
 0x196   :  { %v269_v15 = vmul.f32 %v268_v5, %v1033_v27  ;;  %v515_v17 = vmul.f32 %v514_v6, %v1076_v20  ;;  %v221_v12 = vadd.f32 0.19993454, %v220_v13  ;;  %v467_v23 = vadd.f32 -0.074975304, %v466_v14 }
 0x197   :  { %p723_p12 = pnand %p722_p11, %p716_p8 }
 0x198   :  { %v270_v26 = vadd.f32 -0.33333147, %v269_v15  ;;  %v516_v34 = vadd.f32 0.1064488, %v515_v17  ;;  %v222_v11 = vmul.f32 %v221_v12, %v1053_v38  ;;  %v468_v35 = vmul.f32 %v467_v23, %v1089_v40 }
 0x199   :  { %v773_v12 = vmov 0.7853982  }
 0x19a   :  { %v271_v36 = vmul.f32 %v270_v26, %v1033_v27  ;;  %v517_v42 = vmul.f32 %v516_v34, %v1076_v20  ;;  %v223_v22 = vadd.f32 -0.33333147, %v222_v11  ;;  %v469_v44 = vadd.f32 0.1064488, %v468_v35 }
 0x19b   :  { %v289_v23 = vsel %vm277_vm11, 2.3561945, %v773_v12 }
 0x19c   :  { %v272_v47 = vmul.f32 %v271_v36, %v1008_v18  ;;  %v518_v48 = vadd.f32 -0.14207031, %v517_v42  ;;  %v224_v21 = vmul.f32 %v223_v22, %v1053_v38  ;;  %v470_v49 = vmul.f32 %v469_v44, %v1089_v40 }
 0x19d   :  { %v772_v38 = vmov 0.0  }
 0x19e   :  { %v273_v50 = vadd.f32 %v272_v47, %v1008_v18  ;;  %v519_v52 = vmul.f32 %v518_v48, %v1076_v20  ;;  %v225_v54 = vmul.f32 %v224_v21, %v1039_v30  ;;  %v471_v27 = vadd.f32 -0.14207031, %v470_v49 }
 0x19f   :  { %v281_v63 = vsel %vm280_vm10, 3.1415927, %v772_v38  ;;  %vm230_vm10 = vcmp.lt.f32.partialorder %v862_v31, 0.0  ;;  %v234_v39 = vsel %vm233_vm6, 3.1415927, %v772_v38  ;;  %v248_v21 = vand.u32 2147483648, %v899_v45 }
 0x1a0   :  { %v275_v55 = vsub.f32 1.5707964, %v273_v50  ;;  %v520_v56 = vadd.f32 0.19993454, %v519_v52  ;;  %v226_v59 = vadd.f32 %v225_v54, %v1039_v30  ;;  %v472_v61 = vmul.f32 %v471_v27, %v1089_v40 }
 0x1a1   :  { %v242_v22 = vsel %vm230_vm10, 2.3561945, %v773_v12 }
 0x1a2   :  { %v276_v18 = vsel %vm274_vm7, %v275_v55, %v273_v50  ;;  %v521_v0 = vmul.f32 %v520_v56, %v1076_v20  ;;  %v228_v5 = vsub.f32 1.5707964, %v226_v59  ;;  %v473_v6 = vadd.f32 0.19993454, %v472_v61 }
 0x1a3   :  { %v278_v46 = vsub.f32 3.1415927, %v276_v18  ;;  %vm235_vm7 = vcmp.eq.f32.partialorder %v899_v45, 0.0 }
 0x1a4   :  { %v522_v13 = vadd.f32 -0.33333147, %v521_v0  ;;  %v229_v14 = vsel %vm227_vm13, %v228_v5, %v226_v59  ;;  %v474_v33 = vmul.f32 %v473_v6, %v1089_v40  ;;  %vm534_vm13 = vcmp.eq.f32.partialorder %v968_v4, 0.0 }
 0x1a5   :  { %v279_v30 = vsel %vm277_vm11, %v278_v46, %v276_v18  ;;  %v231_v15 = vsub.f32 3.1415927, %v229_v14  ;;  %v547_v59 = vand.u32 2147483648, %v968_v4 }
 0x1a6   :  { %v283_v41 = vsel %vm282_vm14, %v281_v63, %v279_v30  ;;  %v523_v17 = vmul.f32 %v522_v13, %v1076_v20  ;;  %v475_v34 = vadd.f32 -0.33333147, %v474_v33  ;;  %v295_v20 = vand.u32 2147483648, %v875_v37 }
 0x1a7   :  { %v287_v26 = vsel %vm890_vm5, nan, %v283_v41  ;;  %v232_v11 = vsel %vm230_vm10, %v231_v15, %v229_v14  ;;  %vm532_vm5 = vcmp.lt.s32.totalorder %v952_v62, 0 }
 0x1a8   :  { %v293_v51 = vsel %vm916_vm9, %v289_v23, %v287_v26  ;;  %v524_v35 = vmul.f32 %v523_v17, %v1068_v3  ;;  %v236_v42 = vsel %vm235_vm7, %v234_v39, %v232_v11  ;;  %v476_v28 = vmul.f32 %v475_v34, %v1089_v40 }
 0x1a9   :  { %v294_v36 = vand.u32 2147483647, %v293_v51  ;;  %v240_v31 = vsel %vm932_vm12, nan, %v236_v42  ;;  %vm529_vm9 = vcmp.lt.f32.partialorder %v952_v62, 0.0  ;;  %v533_v60 = vsel %vm532_vm5, 3.1415927, %v772_v38 }
 0x1aa   :  { %v525_v43 = vadd.f32 %v524_v35, %v1068_v3  ;;  %v246_v53 = vsel %vm945_vm15, %v242_v22, %v240_v31  ;;  %v477_v47 = vmul.f32 %v476_v28, %v1080_v29  ;;  %vm485_vm12 = vcmp.lt.s32.totalorder %v964_v2, 0 }
 0x1ab   :  { %v296_v44 = vor.u32 %v295_v20, %v294_v36  ;;  %v247_v48 = vand.u32 2147483647, %v246_v53  ;;  %v541_v27 = vsel %vm529_vm9, 2.3561945, %v773_v12  ;;  %vm482_vm15 = vcmp.lt.f32.partialorder %v964_v2, 0.0 }
 0x1ac   :  { %v527_v49 = vsub.f32 1.5707964, %v525_v43  ;;  %v478_v37 = vadd.f32 %v477_v47, %v1080_v29  ;;  %v486_v7 = vsel %vm485_vm12, 3.1415927, %v772_v38  ;;  %v494_v16 = vsel %vm482_vm15, 2.3561945, %v773_v12 }
 0x1ad   :  { %298 = vst [vmem:[#allocation7 + $0x8] sm:$0xff] %v296_v44  ;;  %v249_v40 = vor.u32 %v248_v21, %v247_v48 }
 0x1ae   :  { %v528_v57 = vsel %vm526_vm8, %v527_v49, %v525_v43  ;;  %v480_v50 = vsub.f32 1.5707964, %v478_v37  ;;  %vm487_vm8 = vcmp.eq.f32.partialorder %v991_v10, 0.0 }
 0x1af   :  { %v530_v3 = vsub.f32 3.1415927, %v528_v57  ;;  %297 = vst [vmem:[#allocation7] sm:$0xff] %v249_v40 }
 0x1b0   :  { %v481_v29 = vsel %vm479_vm2, %v480_v50, %v478_v37 }
 0x1b1   :  { %v531_v45 = vsel %vm529_vm9, %v530_v3, %v528_v57  ;;  %v483_v54 = vsub.f32 3.1415927, %v481_v29 }
 0x1b2   :  { %v535_v52 = vsel %vm534_vm13, %v533_v60, %v531_v45 }
 0x1b3   :  { %v539_v1 = vsel %vm984_vm4, nan, %v535_v52  ;;  %v484_v55 = vsel %vm482_vm15, %v483_v54, %v481_v29 }
 0x1b4   :  { %v545_v62 = vsel %vm1011_vm1, %v541_v27, %v539_v1  ;;  %v488_v8 = vsel %vm487_vm8, %v486_v7, %v484_v55 }
 0x1b5   :  { %v546_v56 = vand.u32 2147483647, %v545_v62  ;;  %v492_v61 = vsel %vm1027_vm0, nan, %v488_v8 }
 0x1b6   :  { %v498_v2 = vsel %vm1042_vm3, %v494_v16, %v492_v61 }
 0x1b7   :  { %v548_v63 = vor.u32 %v547_v59, %v546_v56  ;;  %v499_v9 = vand.u32 2147483647, %v498_v2 }
 0x1b9   :  { %551 = vst [vmem:[#allocation7 + $0x18] sm:$0xff] %v548_v63  ;;  %v501_v38 = vor.u32 %v500_v19, %v499_v9 }
 0x1bb   :  { %550 = vst [vmem:[#allocation7 + $0x10] sm:$0xff] %v501_v38 }
 0x1bc   :  { %726 = shalt.err (!%p723_p12)
}
 0x1bd   :  { %s727_s30 = scalar_lea.hbm %s1225_s5, 512 }
 0x1be   :  { %p728_p13 = scmp.ne.s32.totalorder %s1225_s5, %s727_s30  ;;  %p731_p0 = scmp.lt.u32.totalorder %s727_s30, %s1225_s5 }
 0x1c0   :  { %p733_p1 = pnand %p731_p0, %p728_p13 }
 0x1c2   :  { %736 = shalt.err (!%p733_p1)
}
 0x1c3   :  { %587 = dma.vmem_to_hbm [thread:$0]  %s582_s0, 512, %s1225_s5, [#allocation6], %s770_s23, %s770_s23, %s771_s24  }
 0x1c4   :  { %v28_v18 = vld [vmem:[%s1222_s2] sm:$0xf]  ;;  %s775_s5 = smov [#allocation3]  }
 0x1c5   :  { %s557_s13 = sshll.u32 %s775_s5, 4  ;;  %s558_s13 = int_to_ptr.vmem [resolvable:$true] %s557_s13 }
 0x1c6   :  { %s737_s14 = scalar_lea.vmem %s558_s13, 128  ;;  %p742_p3 = scmp.lt.s32.totalorder %s558_s13, %s558_s13 }
 0x1c7   :  { %p738_p2 = scmp.ne.s32.totalorder %s558_s13, %s737_s14  ;;  %p743_p4 = scmp.lt.s32.totalorder %s737_s14, %s737_s14 }
 0x1c9   :  { %p744_p5 = por %p743_p4, %p742_p3 }
 0x1cb   :  { %p745_p6 = pnand %p744_p5, %p738_p2 }
 0x1ce   :  { %v171_v4 = vpop.permute.xlu0 %170 }
 0x1d2   :  { %v168_v10 = vpop.permute.xlu0 %167 }
 0x1d3   :  { %v169_v24 = vadd.f32 %v168_v10, %v851_v25 }
 0x1d5   :  { %v172_v32 = vadd.f32 %v171_v4, %v169_v24 }
 0x1d6   :  { %v177_v0 = vpop.permute.xlu0 %176  ;;  %v421_v5 = vpop.permute.xlu1 %420 }
 0x1d7   :  { %v178_v46 = vadd.f32 %v177_v0, %v172_v32 }
 0x1d9   :  { %v179_v6 = vmul.f32 %v178_v46, %v28_v18 }
 0x1db   :  { %180 = vst [vmem:[#allocation3] sm:$0xf] %v179_v6 }
 0x1dc   :  { %v418_v13 = vpop.permute.xlu1 %417 }
 0x1dd   :  { %v419_v30 = vadd.f32 %v418_v13, %v942_v58 }
 0x1df   :  { %v422_v14 = vadd.f32 %v421_v5, %v419_v30 }
 0x1e0   :  { %v427_v33 = vpop.permute.xlu1 %426 }
 0x1e1   :  { %v428_v41 = vadd.f32 %v427_v33, %v422_v14 }
 0x1e3   :  { %v429_v15 = vmul.f32 %v428_v41, %v28_v18 }
 0x1e5   :  { %431 = vst [vmem:[#allocation3 + $0x4] sm:$0xf] %v429_v15 }
 0x1e6   :  { %748 = shalt.err (!%p745_p6)
}
 0x1e7   :  { %s749_s16 = scalar_lea.hbm %s1223_s3, 128 }
 0x1e8   :  { %p750_p7 = scmp.ne.s32.totalorder %s1223_s3, %s749_s16  ;;  %p753_p8 = scmp.lt.u32.totalorder %s749_s16, %s1223_s3 }
 0x1ea   :  { %p755_p9 = pnand %p753_p8, %p750_p7 }
 0x1ec   :  { %758 = shalt.err (!%p755_p9)
}
 0x1ed   :  { %s776_s21 = smov 64   ;;  %s777_s22 = smov 4  }
 0x1ee   :  { %563 = dma.vmem_to_hbm [thread:$0]  %s558_s13, 128, %s1223_s3, [#allocation4], %s776_s21, %s776_s21, %s777_s22  }
 0x1ef   :  { %759 = dma.done.wait [#allocation4], 128  }
 0x1f0   :  { %760 = vsyncadd [#allocation4], 4294967168 }
 0x1f1   :  { %761 = dma.done.wait [#allocation6], 1024  }
 0x1f2   :  { %762 = vsyncadd [#allocation6], 4294966272 }
 0x1f3   :  { %597 = vsyncpa [#allocation4], 1 }
 0x1f4   :  { %598 = vsyncpa [#allocation6], 1 }

</bundles_post_ra>
